<compile_context>
chip_gen: v5e
topology: v5e:2x2
jax: 0.10.0
libtpu: 0.0.40
codegen_flags: <defaults>
</compile_context>

<pallas_src>
import functools

import numpy as np
import jax
import jax.numpy as jnp
from jax.experimental import pallas as pl
from jax.experimental.pallas import tpu as pltpu

BN_EPS = 1e-5


# ----------------------------- helpers ---------------------------------------

def bilinear_matrix(n_in, n_out):
    """align_corners=True interpolation matrix [n_out, n_in] (rows sum to 1)."""
    m = np.zeros((n_out, n_in), np.float32)
    if n_in == 1:                        # degenerate axis: plain replication
        m[:, 0] = 1.0
        return m
    for i in range(n_out):
        src = i * (n_in - 1) / (n_out - 1) if n_out > 1 else 0.0
        lo = min(int(np.floor(src)), n_in - 2)
        frac = src - lo
        m[i, lo] += 1.0 - frac
        m[i, lo + 1] += frac
    return m


def conv_tap_masks(h2, w2):
    """[9, H2*W2] 0/1 masks: tap (dy,dx) is valid where the shifted source
    pixel (h+dy-1, w+dx-1) lies inside the image (zero padding elsewhere)."""
    m = np.zeros((9, h2 * w2), np.float32)
    hh, ww = np.meshgrid(np.arange(h2), np.arange(w2), indexing="ij")
    for k in range(9):
        dy, dx = divmod(k, 3)
        valid = ((hh + dy - 1 >= 0) & (hh + dy - 1 < h2) &
                 (ww + dx - 1 >= 0) & (ww + dx - 1 < w2))
        m[k] = valid.reshape(-1).astype(np.float32)
    return m


def fold_bn(conv_b, gamma, beta, mean, var):
    # eval-mode BN + conv bias folded into per-channel scale/bias (columns)
    s = gamma / jnp.sqrt(var + BN_EPS)
    return s.reshape(-1, 1), ((conv_b - mean) * s + beta).reshape(-1, 1)


def _full_spec(shape):
    nd = len(shape)
    return pl.BlockSpec(tuple(int(s) for s in shape), lambda b, _n=nd: (0,) * _n)


# ----------------------------- fused Pallas kernel ---------------------------

def up_fused_kernel(x1_ref, skip_ref, wup_ref, bup_ref, kront_ref,
                    w1s_ref, w1u_ref, s1_ref, b1_ref,
                    w2_ref, s2_ref, b2_ref, masks_ref, o_ref, *, w2dim):
    cout = o_ref.shape[1]
    hw2 = o_ref.shape[2]

    # ---- 1x1 conv at LOW resolution (commutes with the linear upsample) -----
    x1 = x1_ref[0]                                                  # [Cin, H*W]
    y0 = jnp.dot(wup_ref[...], x1,
                 preferred_element_type=jnp.float32) + bup_ref[...]  # [Cmid, H*W]

    # ---- bilinear x2 upsample (align_corners=True), lane-dense output -------
    # kron rows sum to 1 -> the 1x1-conv bias passes through; ReLU afterwards.
    up = jnp.dot(y0, kront_ref[...],
                 preferred_element_type=jnp.float32)                # [Cmid, H2*W2]
    up = jnp.maximum(up, 0.0)

    skip = skip_ref[0]                                              # [Cskip, H2*W2]
    masks = masks_ref[...]                                          # [9, H2*W2]

    def conv3x3_combine(p9):
        # p9: [9*Cout, H2*W2]; rows (dy*3+dx)*Cout .. +Cout hold W_{dy,dx} @ x
        # evaluated at the UNSHIFTED pixel.  The true conv output needs tap k
        # evaluated at (h+dy-1, w+dx-1) = flat offset d, realized as a lane
        # rotation by -d plus a precomputed 0/1 border mask (zero padding).
        acc = p9[4 * cout:5 * cout, :]                   # centre tap (dy=1,dx=1)
        for k in range(9):
            if k == 4:
                continue
            dy, dx = divmod(k, 3)
            d = (dy - 1) * w2dim + (dx - 1)
            pk = pltpu.roll(p9[k * cout:(k + 1) * cout, :],
                            shift=(-d) % hw2, axis=1)
            acc = acc + pk * masks[k:k + 1, :]
        return acc                                                  # [Cout, H2*W2]

    # ---- conv3x3 #1 (+ channel concat folded via split weights) + BN + ReLU -
    p1 = jnp.dot(w1s_ref[...], skip, preferred_element_type=jnp.float32)
    p1 = p1 + jnp.dot(w1u_ref[...], up, preferred_element_type=jnp.float32)
    y1 = jnp.maximum(conv3x3_combine(p1) * s1_ref[...] + b1_ref[...], 0.0)

    # ---- conv3x3 #2 + BN + ReLU ----------------------------------------------
    p2 = jnp.dot(w2_ref[...], y1, preferred_element_type=jnp.float32)
    y2 = jnp.maximum(conv3x3_combine(p2) * s2_ref[...] + b2_ref[...], 0.0)

    # lane-dense store (last dim = H2*W2, multiple of 128), no transpose.
    o_ref[0] = y2


# ----------------------------- wrapper ----------------------------------------

@jax.jit
def up_forward(params, x1, *x2):
    # x1: [N, Cin, H, W] (NCHW), skips x2[i]: [N, C_i, 2H, 2W]
    n, cin, h, w = x1.shape
    h2, w2 = 2 * h, 2 * w
    hw, hw2 = h * w, h2 * w2
    cmid = cin // 2
    cout = params["c1_w"].shape[0]

    # torch: for x in x2: cur = cat([x, cur]) -> channel order [x2[-1],...,x2[0], up]
    skips = list(x2)[::-1]
    skip = skips[0] if len(skips) == 1 else jnp.concatenate(skips, axis=1)
    cskip = skip.shape[1]
    ctot = cskip + cmid
    assert params["c1_w"].shape[1] == ctot

    # trace-time constants (folded into the executable)
    ah = bilinear_matrix(h, h2)
    aw = bilinear_matrix(w, w2)
    kron_t = jnp.asarray(np.kron(ah, aw).T)          # [H*W, H2*W2]
    masks = jnp.asarray(conv_tap_masks(h2, w2))      # [9, H2*W2]

    # weight-sized layout prep (negligible)
    wup = params["up_w"].reshape(cmid, cin)          # [Cmid, Cin]
    bup = params["up_b"].reshape(cmid, 1)
    # conv weights rearranged to [ (dy*3+dx)*Cout + co , ci ]
    w1m = params["c1_w"].transpose(2, 3, 0, 1).reshape(9 * cout, ctot)
    w1s = w1m[:, :cskip]                             # skip-channel part
    w1u = w1m[:, cskip:]                             # upsampled-channel part
    w2m = params["c2_w"].transpose(2, 3, 0, 1).reshape(9 * cout, cout)
    s1, b1 = fold_bn(params["c1_b"], params["bn1_g"], params["bn1_be"],
                     params["bn1_m"], params["bn1_v"])
    s2, b2 = fold_bn(params["c2_b"], params["bn2_g"], params["bn2_be"],
                     params["bn2_m"], params["bn2_v"])

    # NCHW flattens to the kernel's [C, spatial] layout for free.
    x1_flat = x1.reshape(n, cin, hw)
    skip_flat = skip.reshape(n, cskip, hw2)

    kernel = functools.partial(up_fused_kernel, w2dim=w2)

    grid_spec = pltpu.PrefetchScalarGridSpec(
        num_scalar_prefetch=0,
        grid=(n,),
        in_specs=[
            pl.BlockSpec((1, cin, hw), lambda b: (b, 0, 0)),
            pl.BlockSpec((1, cskip, hw2), lambda b: (b, 0, 0)),
            _full_spec(wup.shape), _full_spec(bup.shape), _full_spec(kron_t.shape),
            _full_spec(w1s.shape), _full_spec(w1u.shape),
            _full_spec(s1.shape), _full_spec(b1.shape),
            _full_spec(w2m.shape), _full_spec(s2.shape), _full_spec(b2.shape),
            _full_spec(masks.shape),
        ],
        out_specs=pl.BlockSpec((1, cout, hw2), lambda b: (b, 0, 0)),
    )

    out_flat = pl.pallas_call(
        kernel,
        out_shape=jax.ShapeDtypeStruct((n, cout, hw2), jnp.float32),
        grid_spec=grid_spec,
        compiler_params=pltpu.CompilerParams(
            dimension_semantics=("parallel",)),
    )(x1_flat, skip_flat, wup, bup, kron_t, w1s, w1u, s1, b1, w2m, s2, b2, masks)

    return out_flat.reshape(n, cout, h2, w2)         # free reshape back to NCHW


# ----------------------------- parameters -------------------------------------

def init_params(key, cin, cout):
    cmid = cin // 2
    ks = jax.random.split(key, 6)

    def u(k, shape, fan_in):
        bound = 1.0 / float(np.sqrt(fan_in))
        return jax.random.uniform(k, shape, jnp.float32, -bound, bound)

    ar = lambda c: jnp.arange(c, dtype=jnp.float32)
    return dict(
        up_w=u(ks[0], (cmid, cin, 1, 1), cin), up_b=u(ks[1], (cmid,), cin),
        c1_w=u(ks[2], (cout, cin, 3, 3), cin * 9), c1_b=u(ks[3], (cout,), cin * 9),
        c2_w=u(ks[4], (cout, cout, 3, 3), cout * 9), c2_b=u(ks[5], (cout,), cout * 9),
        bn1_g=1.0 + 0.05 * ar(cout), bn1_be=0.01 * ar(cout),
        bn1_m=0.02 * ar(cout), bn1_v=1.0 + 0.1 * ar(cout),
        bn2_g=1.0 - 0.03 * ar(cout), bn2_be=-0.02 * ar(cout),
        bn2_m=0.01 * ar(cout), bn2_v=1.0 + 0.05 * ar(cout),
    )


# ----------------------------- pure-JAX reference ------------------------------

def ref_forward(params, x1, *x2):
    n, cin, h, w = x1.shape
    h2, w2 = 2 * h, 2 * w
    cmid = cin // 2
    ah = jnp.asarray(bilinear_matrix(h, h2))
    aw = jnp.asarray(bilinear_matrix(w, w2))
    up = jnp.einsum("oh,nchw,pw->ncop", ah, x1, aw)
    y = jnp.einsum("nchw,oc->nohw", up, params["up_w"].reshape(cmid, cin))
    y = jnp.maximum(y + params["up_b"][None, :, None, None], 0.0)
    for skip in x2:
        y = jnp.concatenate([skip, y], axis=1)

    def block(x, wgt, b, g, beta, m, v):
        out = jax.lax.conv_general_dilated(
            x, wgt, (1, 1), ((1, 1), (1, 1)),
            dimension_numbers=("NCHW", "OIHW", "NCHW"))
        out = out + b[None, :, None, None]
        out = (out - m[None, :, None, None]) / jnp.sqrt(v[None, :, None, None] + BN_EPS)
        out = out * g[None, :, None, None] + beta[None, :, None, None]
        return jnp.maximum(out, 0.0)

    y = block(y, params["c1_w"], params["c1_b"], params["bn1_g"],
              params["bn1_be"], params["bn1_m"], params["bn1_v"])
    y = block(y, params["c2_w"], params["c2_b"], params["bn2_g"],
              params["bn2_be"], params["bn2_m"], params["bn2_v"])
    return y


# ----------------------------- main --------------------------------------------

if __name__ == "__main__":
    key = jax.random.PRNGKey(0)
    k1, k2, kp = jax.random.split(key, 3)

    N, CIN, COUT, H, W = 2, 8, 4, 8, 8          # Up(in_channels=8, out_channels=4)
    x1 = jax.random.normal(k1, (N, CIN, H, W), jnp.float32)
    skip = jax.random.normal(k2, (N, CIN // 2, 2 * H, 2 * W), jnp.float32)
    params = init_params(kp, CIN, COUT)

    out = jax.block_until_ready(up_forward(params, x1, skip))
    ref = jax.block_until_ready(ref_forward(params, x1, skip))

    assert out.shape == (N, COUT, 2 * H, 2 * W), out.shape
    err = float(np.max(np.abs(np.asarray(out) - np.asarray(ref))))
    assert np.allclose(np.asarray(out), np.asarray(ref), atol=1e-4, rtol=1e-4), err
    print("KERNEL_OK")
</pallas_src>

<mosaic_0001>
module attributes {stable_mosaic.version = 11 : i64} {
  func.func @up_fused_kernel(%arg0: i32, %arg1: memref<1x8x64xf32, #tpu.memory_space<vmem>>, %arg2: memref<1x4x256xf32, #tpu.memory_space<vmem>>, %arg3: memref<4x8xf32, #tpu.memory_space<vmem>>, %arg4: memref<4x1xf32, #tpu.memory_space<vmem>>, %arg5: memref<64x256xf32, #tpu.memory_space<vmem>>, %arg6: memref<36x4xf32, #tpu.memory_space<vmem>>, %arg7: memref<36x4xf32, #tpu.memory_space<vmem>>, %arg8: memref<4x1xf32, #tpu.memory_space<vmem>>, %arg9: memref<4x1xf32, #tpu.memory_space<vmem>>, %arg10: memref<36x4xf32, #tpu.memory_space<vmem>>, %arg11: memref<4x1xf32, #tpu.memory_space<vmem>>, %arg12: memref<4x1xf32, #tpu.memory_space<vmem>>, %arg13: memref<9x256xf32, #tpu.memory_space<vmem>>, %arg14: memref<1x4x256xf32, #tpu.memory_space<vmem>>) attributes {dimension_semantics = [#tpu.dimension_semantics<parallel>], iteration_bounds = array<i64: 2>, scalar_prefetch = 0 : i64, scratch_operands = 0 : i64, tpu.core_type = #tpu.core_type<tc>, window_params = [{transform_indices = @transform_0, window_bounds = array<i64: 1, 8, 64>}, {transform_indices = @transform_1, window_bounds = array<i64: 1, 4, 256>}, {pipeline_mode = #tpu.pipeline_mode<synchronous>, transform_indices = @transform_2, window_bounds = array<i64: 4, 8>}, {pipeline_mode = #tpu.pipeline_mode<synchronous>, transform_indices = @transform_3, window_bounds = array<i64: 4, 1>}, {pipeline_mode = #tpu.pipeline_mode<synchronous>, transform_indices = @transform_4, window_bounds = array<i64: 64, 256>}, {pipeline_mode = #tpu.pipeline_mode<synchronous>, transform_indices = @transform_5, window_bounds = array<i64: 36, 4>}, {pipeline_mode = #tpu.pipeline_mode<synchronous>, transform_indices = @transform_6, window_bounds = array<i64: 36, 4>}, {pipeline_mode = #tpu.pipeline_mode<synchronous>, transform_indices = @transform_7, window_bounds = array<i64: 4, 1>}, {pipeline_mode = #tpu.pipeline_mode<synchronous>, transform_indices = @transform_8, window_bounds = array<i64: 4, 1>}, {pipeline_mode = #tpu.pipeline_mode<synchronous>, transform_indices = @transform_9, window_bounds = array<i64: 36, 4>}, {pipeline_mode = #tpu.pipeline_mode<synchronous>, transform_indices = @transform_10, window_bounds = array<i64: 4, 1>}, {pipeline_mode = #tpu.pipeline_mode<synchronous>, transform_indices = @transform_11, window_bounds = array<i64: 4, 1>}, {pipeline_mode = #tpu.pipeline_mode<synchronous>, transform_indices = @transform_12, window_bounds = array<i64: 9, 256>}, {transform_indices = @transform_13, window_bounds = array<i64: 1, 4, 256>}]} {
    %c0 = arith.constant 0 : index
    %c0_0 = arith.constant 0 : index
    %c0_1 = arith.constant 0 : index
    %0 = vector.load %arg1[%c0, %c0_0, %c0_1] : memref<1x8x64xf32, #tpu.memory_space<vmem>>, vector<1x8x64xf32>
    %1 = vector.shape_cast %0 : vector<1x8x64xf32> to vector<8x64xf32>
    %c0_2 = arith.constant 0 : index
    %c0_3 = arith.constant 0 : index
    %2 = vector.load %arg3[%c0_2, %c0_3] : memref<4x8xf32, #tpu.memory_space<vmem>>, vector<4x8xf32>
    %cst = arith.constant dense<0.000000e+00> : vector<4x64xf32>
    %3 = tpu.matmul %2, %1, %cst {dimension_numbers = #tpu.dot_dimension_numbers<[1], [0], [0], [1], [0, 0, 1, 1], [], []>} : vector<4x8xf32>, vector<8x64xf32>, vector<4x64xf32> -> vector<4x64xf32>
    %c0_4 = arith.constant 0 : index
    %c0_5 = arith.constant 0 : index
    %4 = vector.load %arg4[%c0_4, %c0_5] : memref<4x1xf32, #tpu.memory_space<vmem>>, vector<4x1xf32>
    %5 = vector.broadcast %4 : vector<4x1xf32> to vector<4x64xf32>
    %6 = arith.addf %3, %5 : vector<4x64xf32>
    %c0_6 = arith.constant 0 : index
    %c0_7 = arith.constant 0 : index
    %7 = vector.load %arg5[%c0_6, %c0_7] : memref<64x256xf32, #tpu.memory_space<vmem>>, vector<64x256xf32>
    %cst_8 = arith.constant dense<0.000000e+00> : vector<4x256xf32>
    %8 = tpu.matmul %6, %7, %cst_8 {dimension_numbers = #tpu.dot_dimension_numbers<[1], [0], [0], [1], [0, 0, 1, 1], [], []>} : vector<4x64xf32>, vector<64x256xf32>, vector<4x256xf32> -> vector<4x256xf32>
    %cst_9 = arith.constant 0.000000e+00 : f32
    %9 = vector.broadcast %cst_9 : f32 to vector<4x256xf32>
    %10 = arith.maximumf %8, %9 : vector<4x256xf32>
    %c0_10 = arith.constant 0 : index
    %c0_11 = arith.constant 0 : index
    %c0_12 = arith.constant 0 : index
    %11 = vector.load %arg2[%c0_10, %c0_11, %c0_12] : memref<1x4x256xf32, #tpu.memory_space<vmem>>, vector<1x4x256xf32>
    %12 = vector.shape_cast %11 : vector<1x4x256xf32> to vector<4x256xf32>
    %c0_13 = arith.constant 0 : index
    %c0_14 = arith.constant 0 : index
    %13 = vector.load %arg13[%c0_13, %c0_14] : memref<9x256xf32, #tpu.memory_space<vmem>>, vector<9x256xf32>
    %c0_15 = arith.constant 0 : index
    %c0_16 = arith.constant 0 : index
    %14 = vector.load %arg6[%c0_15, %c0_16] : memref<36x4xf32, #tpu.memory_space<vmem>>, vector<36x4xf32>
    %cst_17 = arith.constant dense<0.000000e+00> : vector<36x256xf32>
    %15 = tpu.matmul %14, %12, %cst_17 {dimension_numbers = #tpu.dot_dimension_numbers<[1], [0], [0], [1], [0, 0, 1, 1], [], []>} : vector<36x4xf32>, vector<4x256xf32>, vector<36x256xf32> -> vector<36x256xf32>
    %c0_18 = arith.constant 0 : index
    %c0_19 = arith.constant 0 : index
    %16 = vector.load %arg7[%c0_18, %c0_19] : memref<36x4xf32, #tpu.memory_space<vmem>>, vector<36x4xf32>
    %cst_20 = arith.constant dense<0.000000e+00> : vector<36x256xf32>
    %17 = tpu.matmul %16, %10, %cst_20 {dimension_numbers = #tpu.dot_dimension_numbers<[1], [0], [0], [1], [0, 0, 1, 1], [], []>} : vector<36x4xf32>, vector<4x256xf32>, vector<36x256xf32> -> vector<36x256xf32>
    %18 = arith.addf %15, %17 : vector<36x256xf32>
    %19 = vector.extract_strided_slice %18 {offsets = [16, 0], sizes = [4, 256], strides = [1, 1]} : vector<36x256xf32> to vector<4x256xf32>
    %20 = vector.extract_strided_slice %18 {offsets = [0, 0], sizes = [4, 256], strides = [1, 1]} : vector<36x256xf32> to vector<4x256xf32>
    %c17_i32 = arith.constant 17 : i32
    %21 = tpu.dynamic_rotate %20 by %c17_i32 dim 1 : vector<4x256xf32>, i32 -> vector<4x256xf32>
    %22 = vector.extract_strided_slice %13 {offsets = [0, 0], sizes = [1, 256], strides = [1, 1]} : vector<9x256xf32> to vector<1x256xf32>
    %23 = vector.broadcast %22 : vector<1x256xf32> to vector<4x256xf32>
    %24 = arith.mulf %21, %23 : vector<4x256xf32>
    %25 = arith.addf %19, %24 : vector<4x256xf32>
    %26 = vector.extract_strided_slice %18 {offsets = [4, 0], sizes = [4, 256], strides = [1, 1]} : vector<36x256xf32> to vector<4x256xf32>
    %c16_i32 = arith.constant 16 : i32
    %27 = tpu.dynamic_rotate %26 by %c16_i32 dim 1 : vector<4x256xf32>, i32 -> vector<4x256xf32>
    %28 = vector.extract_strided_slice %13 {offsets = [1, 0], sizes = [1, 256], strides = [1, 1]} : vector<9x256xf32> to vector<1x256xf32>
    %29 = vector.broadcast %28 : vector<1x256xf32> to vector<4x256xf32>
    %30 = arith.mulf %27, %29 : vector<4x256xf32>
    %31 = arith.addf %25, %30 : vector<4x256xf32>
    %32 = vector.extract_strided_slice %18 {offsets = [8, 0], sizes = [4, 256], strides = [1, 1]} : vector<36x256xf32> to vector<4x256xf32>
    %c15_i32 = arith.constant 15 : i32
    %33 = tpu.dynamic_rotate %32 by %c15_i32 dim 1 : vector<4x256xf32>, i32 -> vector<4x256xf32>
    %34 = vector.extract_strided_slice %13 {offsets = [2, 0], sizes = [1, 256], strides = [1, 1]} : vector<9x256xf32> to vector<1x256xf32>
    %35 = vector.broadcast %34 : vector<1x256xf32> to vector<4x256xf32>
    %36 = arith.mulf %33, %35 : vector<4x256xf32>
    %37 = arith.addf %31, %36 : vector<4x256xf32>
    %38 = vector.extract_strided_slice %18 {offsets = [12, 0], sizes = [4, 256], strides = [1, 1]} : vector<36x256xf32> to vector<4x256xf32>
    %c1_i32 = arith.constant 1 : i32
    %39 = tpu.dynamic_rotate %38 by %c1_i32 dim 1 : vector<4x256xf32>, i32 -> vector<4x256xf32>
    %40 = vector.extract_strided_slice %13 {offsets = [3, 0], sizes = [1, 256], strides = [1, 1]} : vector<9x256xf32> to vector<1x256xf32>
    %41 = vector.broadcast %40 : vector<1x256xf32> to vector<4x256xf32>
    %42 = arith.mulf %39, %41 : vector<4x256xf32>
    %43 = arith.addf %37, %42 : vector<4x256xf32>
    %44 = vector.extract_strided_slice %18 {offsets = [20, 0], sizes = [4, 256], strides = [1, 1]} : vector<36x256xf32> to vector<4x256xf32>
    %c255_i32 = arith.constant 255 : i32
    %45 = tpu.dynamic_rotate %44 by %c255_i32 dim 1 : vector<4x256xf32>, i32 -> vector<4x256xf32>
    %46 = vector.extract_strided_slice %13 {offsets = [5, 0], sizes = [1, 256], strides = [1, 1]} : vector<9x256xf32> to vector<1x256xf32>
    %47 = vector.broadcast %46 : vector<1x256xf32> to vector<4x256xf32>
    %48 = arith.mulf %45, %47 : vector<4x256xf32>
    %49 = arith.addf %43, %48 : vector<4x256xf32>
    %50 = vector.extract_strided_slice %18 {offsets = [24, 0], sizes = [4, 256], strides = [1, 1]} : vector<36x256xf32> to vector<4x256xf32>
    %c241_i32 = arith.constant 241 : i32
    %51 = tpu.dynamic_rotate %50 by %c241_i32 dim 1 : vector<4x256xf32>, i32 -> vector<4x256xf32>
    %52 = vector.extract_strided_slice %13 {offsets = [6, 0], sizes = [1, 256], strides = [1, 1]} : vector<9x256xf32> to vector<1x256xf32>
    %53 = vector.broadcast %52 : vector<1x256xf32> to vector<4x256xf32>
    %54 = arith.mulf %51, %53 : vector<4x256xf32>
    %55 = arith.addf %49, %54 : vector<4x256xf32>
    %56 = vector.extract_strided_slice %18 {offsets = [28, 0], sizes = [4, 256], strides = [1, 1]} : vector<36x256xf32> to vector<4x256xf32>
    %c240_i32 = arith.constant 240 : i32
    %57 = tpu.dynamic_rotate %56 by %c240_i32 dim 1 : vector<4x256xf32>, i32 -> vector<4x256xf32>
    %58 = vector.extract_strided_slice %13 {offsets = [7, 0], sizes = [1, 256], strides = [1, 1]} : vector<9x256xf32> to vector<1x256xf32>
    %59 = vector.broadcast %58 : vector<1x256xf32> to vector<4x256xf32>
    %60 = arith.mulf %57, %59 : vector<4x256xf32>
    %61 = arith.addf %55, %60 : vector<4x256xf32>
    %62 = vector.extract_strided_slice %18 {offsets = [32, 0], sizes = [4, 256], strides = [1, 1]} : vector<36x256xf32> to vector<4x256xf32>
    %c239_i32 = arith.constant 239 : i32
    %63 = tpu.dynamic_rotate %62 by %c239_i32 dim 1 : vector<4x256xf32>, i32 -> vector<4x256xf32>
    %64 = vector.extract_strided_slice %13 {offsets = [8, 0], sizes = [1, 256], strides = [1, 1]} : vector<9x256xf32> to vector<1x256xf32>
    %65 = vector.broadcast %64 : vector<1x256xf32> to vector<4x256xf32>
    %66 = arith.mulf %63, %65 : vector<4x256xf32>
    %67 = arith.addf %61, %66 : vector<4x256xf32>
    %c0_21 = arith.constant 0 : index
    %c0_22 = arith.constant 0 : index
    %68 = vector.load %arg8[%c0_21, %c0_22] : memref<4x1xf32, #tpu.memory_space<vmem>>, vector<4x1xf32>
    %69 = vector.broadcast %68 : vector<4x1xf32> to vector<4x256xf32>
    %70 = arith.mulf %67, %69 : vector<4x256xf32>
    %c0_23 = arith.constant 0 : index
    %c0_24 = arith.constant 0 : index
    %71 = vector.load %arg9[%c0_23, %c0_24] : memref<4x1xf32, #tpu.memory_space<vmem>>, vector<4x1xf32>
    %72 = vector.broadcast %71 : vector<4x1xf32> to vector<4x256xf32>
    %73 = arith.addf %70, %72 : vector<4x256xf32>
    %cst_25 = arith.constant 0.000000e+00 : f32
    %74 = vector.broadcast %cst_25 : f32 to vector<4x256xf32>
    %75 = arith.maximumf %73, %74 : vector<4x256xf32>
    %c0_26 = arith.constant 0 : index
    %c0_27 = arith.constant 0 : index
    %76 = vector.load %arg10[%c0_26, %c0_27] : memref<36x4xf32, #tpu.memory_space<vmem>>, vector<36x4xf32>
    %cst_28 = arith.constant dense<0.000000e+00> : vector<36x256xf32>
    %77 = tpu.matmul %76, %75, %cst_28 {dimension_numbers = #tpu.dot_dimension_numbers<[1], [0], [0], [1], [0, 0, 1, 1], [], []>} : vector<36x4xf32>, vector<4x256xf32>, vector<36x256xf32> -> vector<36x256xf32>
    %78 = vector.extract_strided_slice %77 {offsets = [16, 0], sizes = [4, 256], strides = [1, 1]} : vector<36x256xf32> to vector<4x256xf32>
    %79 = vector.extract_strided_slice %77 {offsets = [0, 0], sizes = [4, 256], strides = [1, 1]} : vector<36x256xf32> to vector<4x256xf32>
    %c17_i32_29 = arith.constant 17 : i32
    %80 = tpu.dynamic_rotate %79 by %c17_i32_29 dim 1 : vector<4x256xf32>, i32 -> vector<4x256xf32>
    %81 = vector.extract_strided_slice %13 {offsets = [0, 0], sizes = [1, 256], strides = [1, 1]} : vector<9x256xf32> to vector<1x256xf32>
    %82 = vector.broadcast %81 : vector<1x256xf32> to vector<4x256xf32>
    %83 = arith.mulf %80, %82 : vector<4x256xf32>
    %84 = arith.addf %78, %83 : vector<4x256xf32>
    %85 = vector.extract_strided_slice %77 {offsets = [4, 0], sizes = [4, 256], strides = [1, 1]} : vector<36x256xf32> to vector<4x256xf32>
    %c16_i32_30 = arith.constant 16 : i32
    %86 = tpu.dynamic_rotate %85 by %c16_i32_30 dim 1 : vector<4x256xf32>, i32 -> vector<4x256xf32>
    %87 = vector.extract_strided_slice %13 {offsets = [1, 0], sizes = [1, 256], strides = [1, 1]} : vector<9x256xf32> to vector<1x256xf32>
    %88 = vector.broadcast %87 : vector<1x256xf32> to vector<4x256xf32>
    %89 = arith.mulf %86, %88 : vector<4x256xf32>
    %90 = arith.addf %84, %89 : vector<4x256xf32>
    %91 = vector.extract_strided_slice %77 {offsets = [8, 0], sizes = [4, 256], strides = [1, 1]} : vector<36x256xf32> to vector<4x256xf32>
    %c15_i32_31 = arith.constant 15 : i32
    %92 = tpu.dynamic_rotate %91 by %c15_i32_31 dim 1 : vector<4x256xf32>, i32 -> vector<4x256xf32>
    %93 = vector.extract_strided_slice %13 {offsets = [2, 0], sizes = [1, 256], strides = [1, 1]} : vector<9x256xf32> to vector<1x256xf32>
    %94 = vector.broadcast %93 : vector<1x256xf32> to vector<4x256xf32>
    %95 = arith.mulf %92, %94 : vector<4x256xf32>
    %96 = arith.addf %90, %95 : vector<4x256xf32>
    %97 = vector.extract_strided_slice %77 {offsets = [12, 0], sizes = [4, 256], strides = [1, 1]} : vector<36x256xf32> to vector<4x256xf32>
    %c1_i32_32 = arith.constant 1 : i32
    %98 = tpu.dynamic_rotate %97 by %c1_i32_32 dim 1 : vector<4x256xf32>, i32 -> vector<4x256xf32>
    %99 = vector.extract_strided_slice %13 {offsets = [3, 0], sizes = [1, 256], strides = [1, 1]} : vector<9x256xf32> to vector<1x256xf32>
    %100 = vector.broadcast %99 : vector<1x256xf32> to vector<4x256xf32>
    %101 = arith.mulf %98, %100 : vector<4x256xf32>
    %102 = arith.addf %96, %101 : vector<4x256xf32>
    %103 = vector.extract_strided_slice %77 {offsets = [20, 0], sizes = [4, 256], strides = [1, 1]} : vector<36x256xf32> to vector<4x256xf32>
    %c255_i32_33 = arith.constant 255 : i32
    %104 = tpu.dynamic_rotate %103 by %c255_i32_33 dim 1 : vector<4x256xf32>, i32 -> vector<4x256xf32>
    %105 = vector.extract_strided_slice %13 {offsets = [5, 0], sizes = [1, 256], strides = [1, 1]} : vector<9x256xf32> to vector<1x256xf32>
    %106 = vector.broadcast %105 : vector<1x256xf32> to vector<4x256xf32>
    %107 = arith.mulf %104, %106 : vector<4x256xf32>
    %108 = arith.addf %102, %107 : vector<4x256xf32>
    %109 = vector.extract_strided_slice %77 {offsets = [24, 0], sizes = [4, 256], strides = [1, 1]} : vector<36x256xf32> to vector<4x256xf32>
    %c241_i32_34 = arith.constant 241 : i32
    %110 = tpu.dynamic_rotate %109 by %c241_i32_34 dim 1 : vector<4x256xf32>, i32 -> vector<4x256xf32>
    %111 = vector.extract_strided_slice %13 {offsets = [6, 0], sizes = [1, 256], strides = [1, 1]} : vector<9x256xf32> to vector<1x256xf32>
    %112 = vector.broadcast %111 : vector<1x256xf32> to vector<4x256xf32>
    %113 = arith.mulf %110, %112 : vector<4x256xf32>
    %114 = arith.addf %108, %113 : vector<4x256xf32>
    %115 = vector.extract_strided_slice %77 {offsets = [28, 0], sizes = [4, 256], strides = [1, 1]} : vector<36x256xf32> to vector<4x256xf32>
    %c240_i32_35 = arith.constant 240 : i32
    %116 = tpu.dynamic_rotate %115 by %c240_i32_35 dim 1 : vector<4x256xf32>, i32 -> vector<4x256xf32>
    %117 = vector.extract_strided_slice %13 {offsets = [7, 0], sizes = [1, 256], strides = [1, 1]} : vector<9x256xf32> to vector<1x256xf32>
    %118 = vector.broadcast %117 : vector<1x256xf32> to vector<4x256xf32>
    %119 = arith.mulf %116, %118 : vector<4x256xf32>
    %120 = arith.addf %114, %119 : vector<4x256xf32>
    %121 = vector.extract_strided_slice %77 {offsets = [32, 0], sizes = [4, 256], strides = [1, 1]} : vector<36x256xf32> to vector<4x256xf32>
    %c239_i32_36 = arith.constant 239 : i32
    %122 = tpu.dynamic_rotate %121 by %c239_i32_36 dim 1 : vector<4x256xf32>, i32 -> vector<4x256xf32>
    %123 = vector.extract_strided_slice %13 {offsets = [8, 0], sizes = [1, 256], strides = [1, 1]} : vector<9x256xf32> to vector<1x256xf32>
    %124 = vector.broadcast %123 : vector<1x256xf32> to vector<4x256xf32>
    %125 = arith.mulf %122, %124 : vector<4x256xf32>
    %126 = arith.addf %120, %125 : vector<4x256xf32>
    %c0_37 = arith.constant 0 : index
    %c0_38 = arith.constant 0 : index
    %127 = vector.load %arg11[%c0_37, %c0_38] : memref<4x1xf32, #tpu.memory_space<vmem>>, vector<4x1xf32>
    %128 = vector.broadcast %127 : vector<4x1xf32> to vector<4x256xf32>
    %129 = arith.mulf %126, %128 : vector<4x256xf32>
    %c0_39 = arith.constant 0 : index
    %c0_40 = arith.constant 0 : index
    %130 = vector.load %arg12[%c0_39, %c0_40] : memref<4x1xf32, #tpu.memory_space<vmem>>, vector<4x1xf32>
    %131 = vector.broadcast %130 : vector<4x1xf32> to vector<4x256xf32>
    %132 = arith.addf %129, %131 : vector<4x256xf32>
    %cst_41 = arith.constant 0.000000e+00 : f32
    %133 = vector.broadcast %cst_41 : f32 to vector<4x256xf32>
    %134 = arith.maximumf %132, %133 : vector<4x256xf32>
    %c0_42 = arith.constant 0 : index
    %c0_43 = arith.constant 0 : index
    %c0_44 = arith.constant 0 : index
    %135 = vector.load %arg14[%c0_42, %c0_43, %c0_44] : memref<1x4x256xf32, #tpu.memory_space<vmem>>, vector<1x4x256xf32>
    %136 = vector.shape_cast %135 : vector<1x4x256xf32> to vector<4x256xf32>
    %137 = vector.shape_cast %134 : vector<4x256xf32> to vector<1x4x256xf32>
    tpu.vector_store %arg14[%c0_42, %c0_43, %c0_44], %137 {strides = array<i32>} : memref<1x4x256xf32, #tpu.memory_space<vmem>>, vector<1x4x256xf32>,
    return
  }
  func.func @transform_0(%arg0: i32) -> (i32, i32, i32) {
    %c0_i32 = arith.constant 0 : i32
    %c0_i32_0 = arith.constant 0 : i32
    %c0_i32_1 = arith.constant 0 : i32
    return %arg0, %c0_i32, %c0_i32_0 : i32, i32, i32
  }
  func.func @transform_1(%arg0: i32) -> (i32, i32, i32) {
    %c0_i32 = arith.constant 0 : i32
    %c0_i32_0 = arith.constant 0 : i32
    %c0_i32_1 = arith.constant 0 : i32
    return %arg0, %c0_i32, %c0_i32_0 : i32, i32, i32
  }
  func.func @transform_2(%arg0: i32) -> (i32, i32) {
    %c0_i32 = arith.constant 0 : i32
    %c0_i32_0 = arith.constant 0 : i32
    %c0_i32_1 = arith.constant 0 : i32
    return %c0_i32, %c0_i32_0 : i32, i32
  }
  func.func @transform_3(%arg0: i32) -> (i32, i32) {
    %c0_i32 = arith.constant 0 : i32
    %c0_i32_0 = arith.constant 0 : i32
    %c0_i32_1 = arith.constant 0 : i32
    return %c0_i32, %c0_i32_0 : i32, i32
  }
  func.func @transform_4(%arg0: i32) -> (i32, i32) {
    %c0_i32 = arith.constant 0 : i32
    %c0_i32_0 = arith.constant 0 : i32
    %c0_i32_1 = arith.constant 0 : i32
    return %c0_i32, %c0_i32_0 : i32, i32
  }
  func.func @transform_5(%arg0: i32) -> (i32, i32) {
    %c0_i32 = arith.constant 0 : i32
    %c0_i32_0 = arith.constant 0 : i32
    %c0_i32_1 = arith.constant 0 : i32
    return %c0_i32, %c0_i32_0 : i32, i32
  }
  func.func @transform_6(%arg0: i32) -> (i32, i32) {
    %c0_i32 = arith.constant 0 : i32
    %c0_i32_0 = arith.constant 0 : i32
    %c0_i32_1 = arith.constant 0 : i32
    return %c0_i32, %c0_i32_0 : i32, i32
  }
  func.func @transform_7(%arg0: i32) -> (i32, i32) {
    %c0_i32 = arith.constant 0 : i32
    %c0_i32_0 = arith.constant 0 : i32
    %c0_i32_1 = arith.constant 0 : i32
    return %c0_i32, %c0_i32_0 : i32, i32
  }
  func.func @transform_8(%arg0: i32) -> (i32, i32) {
    %c0_i32 = arith.constant 0 : i32
    %c0_i32_0 = arith.constant 0 : i32
    %c0_i32_1 = arith.constant 0 : i32
    return %c0_i32, %c0_i32_0 : i32, i32
  }
  func.func @transform_9(%arg0: i32) -> (i32, i32) {
    %c0_i32 = arith.constant 0 : i32
    %c0_i32_0 = arith.constant 0 : i32
    %c0_i32_1 = arith.constant 0 : i32
    return %c0_i32, %c0_i32_0 : i32, i32
  }
  func.func @transform_10(%arg0: i32) -> (i32, i32) {
    %c0_i32 = arith.constant 0 : i32
    %c0_i32_0 = arith.constant 0 : i32
    %c0_i32_1 = arith.constant 0 : i32
    return %c0_i32, %c0_i32_0 : i32, i32
  }
  func.func @transform_11(%arg0: i32) -> (i32, i32) {
    %c0_i32 = arith.constant 0 : i32
    %c0_i32_0 = arith.constant 0 : i32
    %c0_i32_1 = arith.constant 0 : i32
    return %c0_i32, %c0_i32_0 : i32, i32
  }
  func.func @transform_12(%arg0: i32) -> (i32, i32) {
    %c0_i32 = arith.constant 0 : i32
    %c0_i32_0 = arith.constant 0 : i32
    %c0_i32_1 = arith.constant 0 : i32
    return %c0_i32, %c0_i32_0 : i32, i32
  }
  func.func @transform_13(%arg0: i32) -> (i32, i32, i32) {
    %c0_i32 = arith.constant 0 : i32
    %c0_i32_0 = arith.constant 0 : i32
    %c0_i32_1 = arith.constant 0 : i32
    return %arg0, %c0_i32, %c0_i32_0 : i32, i32, i32
  }
}

</mosaic_0001>

<bundles_post_ra>
// kernel: up_forward.1
= control target key start
LH: loop header
LB: loop body
LE: loop exit
PB: predicated region body
PF: predicated region fallthrough
CT: control target
= control target key end

     0   :  { %s1337_s25 = smov 0   ;;  %s1716_s0 = inlined_call_operand.vmem [shape: f32[2,8,64], index: 0, kind: input, shape index: {}]   ;;  %s1717_s1 = inlined_call_operand.vmem [shape: f32[2,4,256], index: 1, kind: input, shape index: {}]   ;;  %s1718_s2 = inlined_call_operand.vmem [shape: f32[4,8], index: 2, kind: input, shape index: {}]   ;;  %s1719_s3 = inlined_call_operand.vmem [shape: f32[4,1], index: 3, kind: input, shape index: {}]   ;;  %s1720_s4 = inlined_call_operand.vmem [shape: f32[64,256], index: 4, kind: input, shape index: {}]   ;;  %s1721_s5 = inlined_call_operand.vmem [shape: f32[36,4], index: 5, kind: input, shape index: {}]   ;;  %s1722_s6 = inlined_call_operand.vmem [shape: f32[36,4], index: 6, kind: input, shape index: {}]   ;;  %s1723_s7 = inlined_call_operand.vmem [shape: f32[4,1], index: 7, kind: input, shape index: {}]   ;;  %s1724_s8 = inlined_call_operand.vmem [shape: f32[4,1], index: 8, kind: input, shape index: {}]   ;;  %s1725_s9 = inlined_call_operand.vmem [shape: f32[36,4], index: 9, kind: input, shape index: {}]   ;;  %s1726_s10 = inlined_call_operand.vmem [shape: f32[4,1], index: 10, kind: input, shape index: {}]   ;;  %s1727_s11 = inlined_call_operand.vmem [shape: f32[4,1], index: 11, kind: input, shape index: {}]   ;;  %s1728_s12 = inlined_call_operand.vmem [shape: f32[9,256], index: 12, kind: input, shape index: {}]   ;;  %s1729_s13 = inlined_call_operand.vmem [shape: f32[2,4,256], index: 13, kind: output, shape index: {}]  }
   0x1 LB: > { %s1174_s26 = sadd.s32 4294967295, %s1256_s25   ;;  %p1178_p0 = scmp.ge.s32.totalorder %s1256_s25, 1  ;;  %s1256_s25 = sphi %s1337_s25, %s23_s25  }
   0x2   : > { %p396_p1 = scmp.lt.s32.totalorder %s1256_s25, 3 }
   0x4   : > { %p397_p2 = pnand %p1178_p0, %p396_p1 }
   0x5   : > { %p444_p3 = scmp.lt.s32.totalorder (!%p397_p2), %s1174_s26, 1  ;;  %s1259_s30 = smov (!%p397_p2), 17  }
   0x6   : > { %400 = sbr.rel (%p397_p2) target bundleno = 879 (0x36f), region = 72  ;;  %s1261_s14 = smov (!%p397_p2), 15  }
   0x7   : > { %s1262_s15 = smov (!%p397_p2), 1   ;;  %s1263_s16 = smov (!%p397_p2), 127  }
   0x8   : > { %s1264_s17 = smov (!%p397_p2), 112   ;;  %s1265_s19 = smov (!%p397_p2), 113  }
   0x9   : > { %s1266_s20 = smov (!%p397_p2), 111  }
   0xb   : > { %v1258_v0 = vmov 0   ;;  %v460_v1 = vld [vmem:[%s1719_s3] sm:$0xf]  ;;  %v505_v2 = vld [vmem:[%s1720_s4 + $0x78] sm:$0xff]  ;;  %s1731_s26 = smov (!%p444_p3, %s1174_s26), 1  ;;  %v503_v3 = vld [vmem:[%s1720_s4 + $0x68] sm:$0xff] }
   0xc   : > { %1246 = vset.pattern.permute.xlu0 %v1258_v0  ;;  %1247 = vset.pattern.permute.xlu2 %v1258_v0  ;;  %v501_v4 = vld [vmem:[%s1720_s4 + $0x58] sm:$0xff]  ;;  %s1357_s18 = sshll.u32 %s1731_s26, 3  ;;  %v459_v5 = vld [vmem:[%s1718_s2] sm:$0xf]  ;;  %vm466_vm0 = vcmask 64512   ;;  %v499_v6 = vld [vmem:[%s1720_s4 + $0x48] sm:$0xff] }
   0xd   : > { %463 = vperm.xlu0 %1246, %v460_v1   ;;  %538 = vmatpush.msra.mxu2 %v505_v2  ;;  %s447_s23 = scalar_lea.vmem %s1716_s0, %s1357_s18  ;;  %s452_s28 = scalar_lea.vmem %s1717_s1, %s1357_s18  ;;  %v504_v9 = vld [vmem:[%s1720_s4 + $0x70] sm:$0xff]  ;;  %v497_v10 = vld [vmem:[%s1720_s4 + $0x38] sm:$0xff]  ;;  %v502_v11 = vld [vmem:[%s1720_s4 + $0x60] sm:$0xff]  ;;  %vm506_vm1 = vcmask 523264   ;;  %vm583_vm2 = vcmask 1043456   ;;  %vm567_vm3 = vcmask 31744  }
   0xe   : > { %v458_v7 = vld [vmem:[%s447_s23] sm:$0xff]  ;;  %v495_v12 = vld [vmem:[%s1720_s4 + $0x28] sm:$0xff]  ;;  %v500_v13 = vld [vmem:[%s1720_s4 + $0x50] sm:$0xff]  ;;  %s1260_s26 = smov 16  }
   0xf   : > { %539 = vmatpush.msra.mxu2 %v503_v3  ;;  %v552_v8 = vld [vmem:[%s452_s28] sm:$0xff]  ;;  %485 = vmatpush.msra.mxu1 %v458_v7  ;;  %v493_v14 = vld [vmem:[%s1720_s4 + $0x18] sm:$0xff]  ;;  %v496_v16 = vld [vmem:[%s1720_s4 + $0x30] sm:$0xff] }
  0x10   : > { %655 = vst [vmem:[#allocation1] ss:$2 sm:$0xff] %v552_v8  ;;  %1184 = vmatmul.msk.f32.vlgmr.msra.gmra.mxu1 %vm466_vm0, %v459_v5  ;;  %v498_v15 = vld [vmem:[%s1720_s4 + $0x40] sm:$0xff]  ;;  %v492_v18 = vld [vmem:[%s1720_s4 + $0x10] sm:$0xff]  ;;  %v491_v20 = vld [vmem:[%s1720_s4 + $0x8] sm:$0xff] }
  0x11   : > { %540 = vmatpush.msra.mxu2 %v501_v4  ;;  %518 = vmatpush.msrb.mxu1 %v504_v9  ;;  %v494_v17 = vld [vmem:[%s1720_s4 + $0x20] sm:$0xff]  ;;  %v563_v27 = vld [vmem:[%s1722_s6 + $0x8] sm:$0xff]  ;;  %v564_v34 = vld [vmem:[%s1722_s6 + $0x10] sm:$0xff] }
  0x12   : > { %v490_v19 = vld [vmem:[%s1720_s4] sm:$0xff]  ;;  %v558_v35 = vld [vmem:[%s1721_s5 + $0x8] sm:$0xff]  ;;  %v565_v36 = vld [vmem:[%s1722_s6 + $0x18] sm:$0xff] }
  0x13   : > { %541 = vmatpush.msra.mxu2 %v499_v6  ;;  %519 = vmatpush.msrb.mxu1 %v502_v11  ;;  %v562_v26 = vld [vmem:[%s1722_s6] sm:$0xff]  ;;  %v559_v37 = vld [vmem:[%s1721_s5 + $0x10] sm:$0xff]  ;;  %v560_v38 = vld [vmem:[%s1721_s5 + $0x18] sm:$0xff] }
  0x14   : > { %v566_v31 = vld [vmem:[%s1722_s6 + $0x20] sm:$0xf] }
  0x15   : > { %542 = vmatpush.msra.mxu2 %v497_v10  ;;  %520 = vmatpush.msrb.mxu1 %v500_v13  ;;  %v557_v33 = vld [vmem:[%s1721_s5] sm:$0xff] }
  0x16   : > { %v561_v39 = vld [vmem:[%s1721_s5 + $0x20] sm:$0xf] }
  0x17   : > { %543 = vmatpush.msra.mxu2 %v495_v12  ;;  %521 = vmatpush.msrb.mxu1 %v498_v15  ;;  %v656_v28 = vld.sshfl [vmem:[#allocation1] sm:$0xff pattern:$0x75316420]  ;;  %v657_v32 = vld.sshfl [vmem:[#allocation1 + $0x8] sm:$0xff pattern:$0x75316420] }
  0x18   : > { %v879_v15 = vld [vmem:[%s1724_s8] sm:$0xf] }
  0x19   : > { %544 = vmatpush.msra.mxu2 %v493_v14  ;;  %522 = vmatpush.msrb.mxu1 %v496_v16  ;;  %v871_v14 = vld [vmem:[%s1723_s7] sm:$0xf] }
  0x1b   : > { %523 = vmatpush.msrb.mxu1 %v494_v17  ;;  %545 = vmatpush.msra.mxu2 %v491_v20  ;;  %v745_v20 = vlaneseq }
  0x1d   : > { %524 = vmatpush.msrb.mxu1 %v492_v18 }
  0x1f   : > { %525 = vmatpush.msrb.mxu1 %v490_v19 }
  0x7f   : > { %v464_v21 = vpop.permute.xlu0 %463 }
  0x8d   : > { %v487_v22 = vpop.f32.mrf.mxu1 }
  0x8e   : > { %v488_v23 = vadd.f32 %v487_v22, %v464_v21  ;;  %v1490_v22 = vand.u32 127, %v745_v20 }
  0x90   : > { %1185 = vmatmul.msk.f32.vlgmr.msrb.gmra.mxu1 %vm506_vm1, %v488_v23  ;;  %1186 = vmatmul.msk.f32.vlgmr.msra.gmra.mxu2 %vm506_vm1, %v488_v23  ;;  %vm747_vm4 = vcmp.lt.s32.totalorder %v1490_v22, 17  ;;  %v1496_v23 = vld [vmem:[%s1728_s12] sm:$0xff]  ;;  %vm766_vm5 = vcmp.lt.s32.totalorder %v1490_v22, 16  ;;  %vm779_vm6 = vcmp.lt.s32.totalorder %v1490_v22, 15  ;;  %vm798_vm7 = vcmp.lt.s32.totalorder %v1490_v22, 1 }
  0x91   : > { %vm817_vm8 = vcmp.lt.s32.totalorder %v1490_v22, 127  ;;  %vm830_vm9 = vcmp.lt.s32.totalorder %v1490_v22, 113  ;;  %vm849_vm10 = vcmp.lt.s32.totalorder %v1490_v22, 112  ;;  %vm862_vm11 = vcmp.lt.s32.totalorder %v1490_v22, 111 }
 0x10d   : > { %v527_v24 = vpop.f32.mrf.mxu1 }
 0x10e   : > { %v550_v25 = vmax.f32 %v527_v24, 0.0  ;;  %v1501_v24 = vld [vmem:[%s1728_s12 + $0x8] sm:$0xff] }
 0x110   : > { %1187 = vmatpush.msk.msra.mxu1 %vm583_vm2, %v550_v25  ;;  %1227 = vmatpush.msk.msra.mxu3 %vm583_vm2, %v550_v25 }
 0x111   : > { %1188 = vmatmul.msk.f32.vlgmr.msra.gmra.mxu1 %vm567_vm3, %v562_v26  ;;  %1189 = vmatmul.msk.f32.vlgmr.msra.gmra.mxu3 %vm567_vm3, %v563_v27 }
 0x112   : > { %1199 = vmatpush.msk.msrb.mxu1 %vm583_vm2, %v656_v28 }
 0x113   : > { %v547_v29 = vpop.f32.mrf.mxu2 }
 0x114   : > { %v551_v30 = vmax.f32 %v547_v29, 0.0 }
 0x116   : > { %1193 = vmatpush.msk.msra.mxu0 %vm583_vm2, %v551_v30  ;;  %1228 = vmatpush.msk.msrb.mxu2 %vm583_vm2, %v551_v30 }
 0x117   : > { %1198 = vmatmul.msk.f32.vlgmr.msrb.gmra.mxu2 %vm567_vm3, %v566_v31  ;;  %1194 = vmatmul.msk.f32.vlgmr.msra.gmra.mxu0 %vm567_vm3, %v562_v26  ;;  %v750_v26 = vperm.slane %v1496_v23, 0 }
 0x118   : > { %1205 = vmatpush.msk.msra.mxu2 %vm583_vm2, %v657_v32 }
 0x119   : > { %1200 = vmatmul.msk.f32.vlgmr.msrb.gmra.mxu1 %vm567_vm3, %v557_v33  ;;  %1190 = vmatmul.msk.f32.gmra.mxu3 %vm567_vm3, %v564_v34 }
 0x11f   : > { %1206 = vmatmul.msk.f32.vlgmr.msra.gmra.mxu2 %vm567_vm3, %v557_v33  ;;  %1195 = vmatmul.msk.f32.gmra.mxu0 %vm567_vm3, %v563_v27  ;;  %v751_v27 = vperm.slane %v1501_v24, 0 }
 0x121   : > { %1201 = vmatmul.msk.f32.gmra.mxu1 %vm567_vm3, %v558_v35  ;;  %1191 = vmatmul.msk.f32.gmra.mxu3 %vm567_vm3, %v565_v36 }
 0x127   : > { %1207 = vmatmul.msk.f32.gmra.mxu2 %vm567_vm3, %v558_v35  ;;  %1196 = vmatmul.msk.f32.gmra.mxu0 %vm567_vm3, %v564_v34  ;;  %v769_v34 = vperm.slane %v1496_v23, 1  ;;  %v770_v35 = vperm.slane %v1501_v24, 1 }
 0x129   : > { %1202 = vmatmul.msk.f32.gmra.mxu1 %vm567_vm3, %v559_v37  ;;  %1192 = vmatmul.msk.f32.gmra.mxu3 %vm567_vm3, %v566_v31 }
 0x12f   : > { %1208 = vmatmul.msk.f32.gmra.mxu2 %vm567_vm3, %v559_v37  ;;  %1197 = vmatmul.msk.f32.gmra.mxu0 %vm567_vm3, %v565_v36  ;;  %v782_v36 = vperm.slane %v1496_v23, 2  ;;  %v783_v37 = vperm.slane %v1501_v24, 2 }
 0x131   : > { %1203 = vmatmul.msk.f32.gmra.mxu1 %vm567_vm3, %v560_v38 }
 0x137   : > { %1209 = vmatmul.msk.f32.gmra.mxu2 %vm567_vm3, %v560_v38 }
 0x139   : > { %1204 = vmatmul.msk.f32.gmra.mxu1 %vm567_vm3, %v561_v39 }
 0x13f   : > { %1210 = vmatmul.msk.f32.gmra.mxu2 %vm567_vm3, %v561_v39 }
 0x18e   : > { %v607_v40 = vpop.f32.mrf.mxu1 }
 0x194   : > { %v610_v43 = vpop.f32.mrf.mxu3  ;;  %v639_v46 = vpop.f32.mrf.mxu0 }
 0x196   : > { %v694_v41 = vpop.f32.mrf.mxu1 }
 0x197   : > { %v695_v42 = vadd.f32 %v694_v41, %v607_v40 }
 0x199   : > { %741 = vrot.lane.b32.xlu0 %v695_v42, %s1259_s30  ;;  %v758_v44 = vrot.slane %v695_v42, 4 }
 0x19a   : > { %v651_v45 = vpop.f32.mrf.mxu2 }
 0x19b   : > { %762 = vrot.lane.b32.xlu1 %v758_v44, %s1260_s26 }
 0x19c   : > { %v613_v51 = vpop.f32.mrf.mxu3  ;;  %v642_v53 = vpop.f32.mrf.mxu0 }
 0x19e   : > { %v697_v47 = vpop.f32.mrf.mxu1 }
 0x19f   : > { %v698_v48 = vadd.f32 %v697_v47, %v610_v43 }
 0x1a1   : > { %v790_v49 = vrot.slane %v698_v48, 4  ;;  %775 = vrot.lane.b32.xlu2 %v698_v48, %s1261_s14 }
 0x1a2   : > { %v726_v50 = vpop.f32.mrf.mxu2 }
 0x1a3   : > { %v727_v52 = vadd.f32 %v726_v50, %v639_v46  ;;  %794 = vrot.lane.b32.xlu1 %v790_v49, %s1262_s15 }
 0x1a4   : > { %v616_v60 = vpop.f32.mrf.mxu3  ;;  %v645_v62 = vpop.f32.mrf.mxu0 }
 0x1a5   : > { %v759_v55 = vrot.slane %v727_v52, 4 }
 0x1a6   : > { %v700_v54 = vpop.f32.mrf.mxu1 }
 0x1a7   : > { %v1469_v56 = vadd.f32 %v700_v54, %v613_v51  ;;  %v801_v51 = vperm.slane %v1496_v23, 3 }
 0x1a9   : > { %v809_v57 = vrot.slane %v1469_v56, 4  ;;  %764 = vrot.lane.b32.xlu2 %v759_v55, %s1260_s26 }
 0x1aa   : > { %v729_v58 = vpop.f32.mrf.mxu2 }
 0x1ab   : > { %v730_v59 = vadd.f32 %v729_v58, %v642_v53  ;;  %813 = vrot.lane.b32.xlu0 %v809_v57, %s1263_s16  ;;  %743 = vrot.lane.b32.xlu1 %v727_v52, %s1259_s30  ;;  %v802_v52 = vperm.slane %v1501_v24, 3 }
 0x1ac   : > { %v648_v4 = vpop.f32.mrf.mxu0  ;;  %v619_v8 = vpop.f32.mrf.mxu3 }
 0x1ad   : > { %v791_v63 = vrot.slane %v730_v59, 4 }
 0x1ae   : > { %v703_v61 = vpop.f32.mrf.mxu1 }
 0x1af   : > { %v704_v0 = vadd.f32 %v703_v61, %v616_v60  ;;  %v821_v60 = vperm.slane %v1501_v24, 5 }
 0x1b1   : > { %v841_v1 = vrot.slane %v704_v0, 4  ;;  %796 = vrot.lane.b32.xlu2 %v791_v63, %s1262_s15 }
 0x1b2   : > { %v732_v2 = vpop.f32.mrf.mxu2 }
 0x1b3   : > { %777 = vrot.lane.b32.xlu0 %v730_v59, %s1261_s14  ;;  %845 = vrot.lane.b32.xlu1 %v841_v1, %s1264_s17  ;;  %v733_v3 = vadd.f32 %v732_v2, %v645_v62  ;;  %v820_v59 = vperm.slane %v1496_v23, 5  ;;  %v834_v1 = vperm.slane %v1501_v24, 6 }
 0x1b5   : > { %v810_v5 = vrot.slane %v733_v3, 4 }
 0x1b6   : > { %v706_v9 = vpop.f32.mrf.mxu1 }
 0x1b7   : > { %v707_v11 = vadd.f32 %v706_v9, %v619_v8 }
 0x1b9   : > { %826 = vrot.lane.b32.xlu2 %v704_v0, %s1265_s19  ;;  %v833_v0 = vperm.slane %v1496_v23, 6 }
 0x1ba   : > { %v735_v6 = vpop.f32.mrf.mxu2 }
 0x1bb   : > { %v736_v7 = vadd.f32 %v735_v6, %v648_v4  ;;  %815 = vrot.lane.b32.xlu1 %v810_v5, %s1263_s16 }
 0x1bd   : > { %828 = vrot.lane.b32.xlu0 %v736_v7, %s1265_s19  ;;  %v842_v10 = vrot.slane %v736_v7, 4 }
 0x1c1   : > { %847 = vrot.lane.b32.xlu2 %v842_v10, %s1264_s17 }
 0x1c2   : > { %v738_v12 = vpop.f32.mrf.mxu2 }
 0x1c3   : > { %v739_v13 = vadd.f32 %v738_v12, %v651_v45 }
 0x1c5   : > { %858 = vrot.lane.b32.xlu0 %v707_v11, %s1266_s20  ;;  %860 = vrot.lane.b32.xlu1 %v739_v13, %s1266_s20 }
 0x1c9   : > { %874 = vperm.xlu2 %1247, %v871_v14  }
 0x1cd   : > { %882 = vperm.xlu0 %1246, %v879_v15  }
 0x1fb   : > { %v776_v16 = vpop.permute.xlu2 %775 }
 0x203   : > { %v765_v18 = vpop.permute.xlu2 %764 }
 0x20b   : > { %v742_v19 = vpop.permute.xlu0 %741  ;;  %v797_v29 = vpop.permute.xlu2 %796 }
 0x20d   : > { %v763_v17 = vpop.permute.xlu1 %762 }
 0x20e   : > { %v767_v38 = vsel %vm766_vm5, %v763_v17, %v765_v18  ;;  %v768_v39 = vsel %vm766_vm5, %v765_v18, %v763_v17  ;;  %v853_v17 = vperm.slane %v1501_v24, 7 }
 0x20f   : > { %v771_v46 = vmul.f32 %v769_v34, %v768_v39  ;;  %v772_v47 = vmul.f32 %v770_v35, %v767_v38 }
 0x213   : > { %v827_v50 = vpop.permute.xlu2 %826 }
 0x215   : > { %v795_v21 = vpop.permute.xlu1 %794 }
 0x216   : > { %v799_v55 = vsel %vm798_vm7, %v795_v21, %v797_v29 }
 0x217   : > { %v804_v62 = vmul.f32 %v802_v52, %v799_v55  ;;  %v889_v55 = vld [vmem:[%s1725_s9] sm:$0xff] }
 0x21b   : > { %v848_v15 = vpop.permute.xlu2 %847 }
 0x21d   : > { %v814_v25 = vpop.permute.xlu0 %813  ;;  %v744_v28 = vpop.permute.xlu1 %743 }
 0x21e   : > { %v748_v30 = vsel %vm747_vm4, %v742_v19, %v744_v28  ;;  %v749_v31 = vsel %vm747_vm4, %v744_v28, %v742_v19  ;;  %v1585_v28 = vld [vmem:[%s1728_s12 + $0x18] ss:$0 sm:$0xff] }
 0x21f   : > { %v752_v32 = vmul.f32 %v750_v26, %v749_v31  ;;  %v753_v33 = vmul.f32 %v751_v27, %v748_v30 }
 0x221   : > { %v754_v40 = vadd.f32 %v752_v32, %v1469_v56  ;;  %v755_v41 = vadd.f32 %v753_v33, %v733_v3  ;;  %v800_v56 = vsel %vm798_vm7, %v797_v29, %v795_v21 }
 0x222   : > { %v803_v61 = vmul.f32 %v801_v51, %v800_v56  ;;  %v890_v56 = vld [vmem:[%s1725_s9 + $0x8] sm:$0xff] }
 0x223   : > { %v773_v53 = vadd.f32 %v771_v46, %v754_v40  ;;  %v774_v54 = vadd.f32 %v772_v47, %v755_v41 }
 0x225   : > { %v778_v42 = vpop.permute.xlu0 %777  ;;  %v846_v43 = vpop.permute.xlu1 %845 }
 0x226   : > { %v780_v44 = vsel %vm779_vm6, %v776_v16, %v778_v42  ;;  %v781_v45 = vsel %vm779_vm6, %v778_v42, %v776_v16  ;;  %v852_v16 = vperm.slane %v1496_v23, 7  ;;  %v850_v18 = vsel %vm849_vm10, %v846_v43, %v848_v15 }
 0x227   : > { %v784_v48 = vmul.f32 %v782_v36, %v781_v45  ;;  %v785_v49 = vmul.f32 %v783_v37, %v780_v44  ;;  %v851_v19 = vsel %vm849_vm10, %v848_v15, %v846_v43  ;;  %v875_v43 = vpop.permute.xlu2 %874 }
 0x228   : > { %v854_v29 = vmul.f32 %v852_v16, %v850_v18  ;;  %v855_v30 = vmul.f32 %v853_v17, %v851_v19 }
 0x229   : > { %v786_v57 = vadd.f32 %v784_v48, %v773_v53  ;;  %v787_v58 = vadd.f32 %v785_v49, %v774_v54 }
 0x22b   : > { %v805_v4 = vadd.f32 %v803_v61, %v786_v57  ;;  %v806_v5 = vadd.f32 %v804_v62, %v787_v58  ;;  %v891_v57 = vld [vmem:[%s1725_s9 + $0x10] sm:$0xff]  ;;  %v892_v58 = vld [vmem:[%s1725_s9 + $0x18] sm:$0xff]  ;;  %v893_v61 = vld [vmem:[%s1725_s9 + $0x20] sm:$0xf] }
 0x22d   : > { %v816_v63 = vpop.permute.xlu1 %815 }
 0x22e   : > { %v818_v2 = vsel %vm817_vm8, %v814_v25, %v816_v63  ;;  %v819_v3 = vsel %vm817_vm8, %v816_v63, %v814_v25  ;;  %v1580_v25 = vld [vmem:[%s1728_s12 + $0x10] ss:$0 sm:$0xff] }
 0x22f   : > { %v822_v6 = vmul.f32 %v820_v59, %v818_v2  ;;  %v823_v7 = vmul.f32 %v821_v60, %v819_v3  ;;  %v829_v8 = vpop.permute.xlu0 %828 }
 0x230   : > { %v831_v9 = vsel %vm830_vm9, %v827_v50, %v829_v8  ;;  %v832_v10 = vsel %vm830_vm9, %v829_v8, %v827_v50 }
 0x231   : > { %v824_v11 = vadd.f32 %v822_v6, %v805_v4  ;;  %v825_v12 = vadd.f32 %v823_v7, %v806_v5  ;;  %v835_v13 = vmul.f32 %v833_v0, %v831_v9  ;;  %v836_v14 = vmul.f32 %v834_v1, %v832_v10 }
 0x233   : > { %v837_v20 = vadd.f32 %v835_v13, %v824_v11  ;;  %v838_v21 = vadd.f32 %v836_v14, %v825_v12 }
 0x235   : > { %v856_v41 = vadd.f32 %v854_v29, %v837_v20  ;;  %v857_v42 = vadd.f32 %v855_v30, %v838_v21  ;;  %v1083_v20 = vld [vmem:[%s1726_s10] sm:$0xf] }
 0x236   : > { %v1091_v21 = vld [vmem:[%s1727_s11] sm:$0xf] }
 0x237   : > { %v859_v31 = vpop.permute.xlu0 %858  ;;  %v861_v32 = vpop.permute.xlu1 %860 }
 0x238   : > { %v863_v33 = vsel %vm862_vm11, %v859_v31, %v861_v32  ;;  %v864_v38 = vsel %vm862_vm11, %v861_v32, %v859_v31 }
 0x239   : > { %v867_v39 = vmul.f32 %v1580_v25, %v863_v33  ;;  %v868_v40 = vmul.f32 %v1585_v28, %v864_v38 }
 0x23b   : > { %v869_v44 = vadd.f32 %v867_v39, %v856_v41  ;;  %v870_v45 = vadd.f32 %v868_v40, %v857_v42 }
 0x23d   : > { %v877_v46 = vmul.f32 %v875_v43, %v869_v44  ;;  %v878_v47 = vmul.f32 %v875_v43, %v870_v45 }
 0x23f   : > { %v883_v48 = vpop.permute.xlu0 %882 }
 0x240   : > { %v885_v49 = vadd.f32 %v883_v48, %v877_v46  ;;  %v886_v50 = vadd.f32 %v883_v48, %v878_v47 }
 0x242   : > { %v887_v53 = vmax.f32 %v885_v49, 0.0  ;;  %v888_v54 = vmax.f32 %v886_v50, 0.0 }
 0x244   : > { %1211 = vmatpush.msk.msrb.mxu3 %vm583_vm2, %v887_v53  ;;  %1217 = vmatpush.msk.msrb.mxu0 %vm583_vm2, %v888_v54 }
 0x245   : > { %1212 = vmatmul.msk.f32.vlgmr.msrb.gmra.mxu3 %vm567_vm3, %v889_v55  ;;  %1218 = vmatmul.msk.f32.vlgmr.msrb.gmra.mxu0 %vm567_vm3, %v889_v55 }
 0x24d   : > { %1213 = vmatmul.msk.f32.gmra.mxu3 %vm567_vm3, %v890_v56  ;;  %1219 = vmatmul.msk.f32.gmra.mxu0 %vm567_vm3, %v890_v56 }
 0x255   : > { %1214 = vmatmul.msk.f32.gmra.mxu3 %vm567_vm3, %v891_v57  ;;  %1220 = vmatmul.msk.f32.gmra.mxu0 %vm567_vm3, %v891_v57 }
 0x25d   : > { %1215 = vmatmul.msk.f32.gmra.mxu3 %vm567_vm3, %v892_v58  ;;  %1221 = vmatmul.msk.f32.gmra.mxu0 %vm567_vm3, %v892_v58 }
 0x265   : > { %1216 = vmatmul.msk.f32.gmra.mxu3 %vm567_vm3, %v893_v61  ;;  %1222 = vmatmul.msk.f32.gmra.mxu0 %vm567_vm3, %v893_v61 }
 0x2c2   : > { %v964_v62 = vpop.f32.mrf.mxu0 }
 0x2c3   : > { %v992_v63 = vrot.slane %v964_v62, 4  ;;  %981 = vrot.lane.b32.xlu2 %v964_v62, %s1259_s30 }
 0x2c5   : > { %997 = vrot.lane.b32.xlu1 %v992_v63, %s1260_s26 }
 0x2c8   : > { %v932_v2 = vpop.f32.mrf.mxu3 }
 0x2c9   : > { %v991_v3 = vrot.slane %v932_v2, 4 }
 0x2ca   : > { %v967_v4 = vpop.f32.mrf.mxu0 }
 0x2cb   : > { %995 = vrot.lane.b32.xlu0 %v991_v3, %s1260_s26  ;;  %v1018_v5 = vrot.slane %v967_v4, 4 }
 0x2cd   : > { %979 = vrot.lane.b32.xlu1 %v932_v2, %s1259_s30  ;;  %1023 = vrot.lane.b32.xlu2 %v1018_v5, %s1262_s15 }
 0x2d0   : > { %v935_v6 = vpop.f32.mrf.mxu3 }
 0x2d1   : > { %v1017_v7 = vrot.slane %v935_v6, 4 }
 0x2d2   : > { %v970_v8 = vpop.f32.mrf.mxu0 }
 0x2d3   : > { %1007 = vrot.lane.b32.xlu0 %v967_v4, %s1261_s14  ;;  %v1034_v11 = vrot.slane %v970_v8, 4 }
 0x2d5   : > { %1021 = vrot.lane.b32.xlu1 %v1017_v7, %s1262_s15  ;;  %1005 = vrot.lane.b32.xlu2 %v935_v6, %s1261_s14 }
 0x2d8   : > { %v938_v9 = vpop.f32.mrf.mxu3 }
 0x2d9   : > { %v1033_v10 = vrot.slane %v938_v9, 4 }
 0x2da   : > { %v973_v13 = vpop.f32.mrf.mxu0 }
 0x2db   : > { %1037 = vrot.lane.b32.xlu0 %v1033_v10, %s1263_s16  ;;  %v1060_v15 = vrot.slane %v973_v13, 4 }
 0x2dd   : > { %1039 = vrot.lane.b32.xlu1 %v1034_v11, %s1263_s16 }
 0x2e0   : > { %v941_v12 = vpop.f32.mrf.mxu3 }
 0x2e1   : > { %v1059_v14 = vrot.slane %v941_v12, 4  ;;  %1047 = vrot.lane.b32.xlu2 %v941_v12, %s1265_s19 }
 0x2e2   : > { %v976_v19 = vpop.f32.mrf.mxu0 }
 0x2e3   : > { %1049 = vrot.lane.b32.xlu0 %v973_v13, %s1265_s19  ;;  %s457_s19 = scalar_lea.vmem %s1729_s13, %s1357_s18 }
 0x2e5   : > { %1063 = vrot.lane.b32.xlu1 %v1059_v14, %s1264_s17 }
 0x2e8   : > { %v944_v18 = vpop.f32.mrf.mxu3 }
 0x2e9   : > { %1065 = vrot.lane.b32.xlu2 %v1060_v15, %s1264_s17 }
 0x2eb   : > { %1073 = vrot.lane.b32.xlu0 %v944_v18, %s1266_s20 }
 0x2ed   : > { %1075 = vrot.lane.b32.xlu1 %v976_v19, %s1266_s20 }
 0x2f1   : > { %1086 = vperm.xlu2 %1247, %v1083_v20  }
 0x2f3   : > { %1094 = vperm.xlu0 %1246, %v1091_v21  }
 0x31d   : > { %v982_v29 = vpop.permute.xlu2 %981 }
 0x327   : > { %v1024_v31 = vpop.permute.xlu2 %1023 }
 0x32f   : > { %v1006_v39 = vpop.permute.xlu2 %1005 }
 0x337   : > { %v998_v30 = vpop.permute.xlu1 %997 }
 0x33b   : > { %v1048_v50 = vpop.permute.xlu2 %1047 }
 0x33d   : > { %v996_v32 = vpop.permute.xlu0 %995 }
 0x33e   : > { %v999_v46 = vsel %vm766_vm5, %v996_v32, %v998_v30  ;;  %v1000_v47 = vsel %vm766_vm5, %v998_v30, %v996_v32 }
 0x33f   : > { %v980_v33 = vpop.permute.xlu1 %979  ;;  %v1002_v55 = vmul.f32 %v999_v46, %v770_v35 }
 0x340   : > { %v983_v41 = vsel %vm747_vm4, %v980_v33, %v982_v29  ;;  %v984_v42 = vsel %vm747_vm4, %v982_v29, %v980_v33 }
 0x341   : > { %v985_v43 = vmul.f32 %v984_v42, %v750_v26  ;;  %v986_v44 = vmul.f32 %v983_v41, %v751_v27  ;;  %v1001_v27 = vmul.f32 %v1000_v47, %v769_v34 }
 0x343   : > { %v987_v53 = vadd.f32 %v985_v43, %v938_v9  ;;  %v988_v54 = vadd.f32 %v986_v44, %v970_v8  ;;  %v1066_v10 = vpop.permute.xlu2 %1065 }
 0x345   : > { %v1008_v38 = vpop.permute.xlu0 %1007  ;;  %v1004_v62 = vadd.f32 %v1002_v55, %v988_v54  ;;  %v1003_v63 = vadd.f32 %v1001_v27, %v987_v53 }
 0x346   : > { %v1009_v48 = vsel %vm779_vm6, %v1006_v39, %v1008_v38  ;;  %v1010_v49 = vsel %vm779_vm6, %v1008_v38, %v1006_v39 }
 0x347   : > { %v1022_v40 = vpop.permute.xlu1 %1021  ;;  %v1011_v56 = vmul.f32 %v1010_v49, %v782_v36  ;;  %v1012_v57 = vmul.f32 %v1009_v48, %v783_v37 }
 0x348   : > { %v1025_v58 = vsel %vm798_vm7, %v1022_v40, %v1024_v31  ;;  %v1026_v61 = vsel %vm798_vm7, %v1024_v31, %v1022_v40 }
 0x349   : > { %v1013_v2 = vadd.f32 %v1011_v56, %v1003_v63  ;;  %v1014_v3 = vadd.f32 %v1012_v57, %v1004_v62  ;;  %v1027_v36 = vmul.f32 %v1026_v61, %v801_v51  ;;  %v1028_v37 = vmul.f32 %v1025_v58, %v802_v52 }
 0x34b   : > { %v1029_v11 = vadd.f32 %v1027_v36, %v1013_v2  ;;  %v1030_v51 = vadd.f32 %v1028_v37, %v1014_v3  ;;  %v1087_v38 = vpop.permute.xlu2 %1086 }
 0x34d   : > { %v1038_v45 = vpop.permute.xlu0 %1037 }
 0x34f   : > { %v1040_v26 = vpop.permute.xlu1 %1039 }
 0x350   : > { %v1041_v34 = vsel %vm817_vm8, %v1038_v45, %v1040_v26  ;;  %v1042_v35 = vsel %vm817_vm8, %v1040_v26, %v1038_v45 }
 0x351   : > { %v1043_v7 = vmul.f32 %v1041_v34, %v820_v59  ;;  %v1044_v8 = vmul.f32 %v1042_v35, %v821_v60 }
 0x353   : > { %v1045_v59 = vadd.f32 %v1043_v7, %v1029_v11  ;;  %v1046_v15 = vadd.f32 %v1044_v8, %v1030_v51 }
 0x355   : > { %v1050_v4 = vpop.permute.xlu0 %1049 }
 0x356   : > { %v1051_v5 = vsel %vm830_vm9, %v1048_v50, %v1050_v4  ;;  %v1052_v6 = vsel %vm830_vm9, %v1050_v4, %v1048_v50 }
 0x357   : > { %v1064_v9 = vpop.permute.xlu1 %1063  ;;  %v1053_v52 = vmul.f32 %v1051_v5, %v833_v0  ;;  %v1054_v12 = vmul.f32 %v1052_v6, %v834_v1 }
 0x358   : > { %v1067_v13 = vsel %vm849_vm10, %v1064_v9, %v1066_v10  ;;  %v1068_v14 = vsel %vm849_vm10, %v1066_v10, %v1064_v9 }
 0x359   : > { %v1055_v18 = vadd.f32 %v1053_v52, %v1045_v59  ;;  %v1056_v60 = vadd.f32 %v1054_v12, %v1046_v15  ;;  %v1069_v19 = vmul.f32 %v1067_v13, %v852_v16  ;;  %v1070_v20 = vmul.f32 %v1068_v14, %v853_v17 }
 0x35b   : > { %v1071_v30 = vadd.f32 %v1069_v19, %v1055_v18  ;;  %v1072_v31 = vadd.f32 %v1070_v20, %v1056_v60 }
 0x35d   : > { %v1074_v0 = vpop.permute.xlu0 %1073 }
 0x35f   : > { %v1076_v21 = vpop.permute.xlu1 %1075 }
 0x360   : > { %v1077_v1 = vsel %vm862_vm11, %v1074_v0, %v1076_v21  ;;  %v1078_v29 = vsel %vm862_vm11, %v1076_v21, %v1074_v0 }
 0x361   : > { %v1079_v32 = vmul.f32 %v1580_v25, %v1077_v1  ;;  %v1080_v33 = vmul.f32 %v1585_v28, %v1078_v29 }
 0x363   : > { %v1081_v23 = vadd.f32 %v1079_v32, %v1071_v30  ;;  %v1082_v16 = vadd.f32 %v1080_v33, %v1072_v31 }
 0x365   : > { %v1089_v24 = vmul.f32 %v1087_v38, %v1081_v23  ;;  %v1090_v17 = vmul.f32 %v1087_v38, %v1082_v16  ;;  %v1095_v39 = vpop.permute.xlu0 %1094 }
 0x367   : > { %v1097_v40 = vadd.f32 %v1095_v39, %v1089_v24  ;;  %v1098_v41 = vadd.f32 %v1095_v39, %v1090_v17 }
 0x369   : > { %v1100_v42 = vmax.f32 %v1098_v41, 0.0  ;;  %v1099_v22 = vmax.f32 %v1097_v40, 0.0 }
 0x36b   : > { %v1103_v43 = vrot.slane %v1100_v42, 4 }
 0x36d   : > { %v1104_v44 = vsel %vm583_vm2, %v1099_v22, %v1103_v43 }
 0x36e   : > { %1106 = vst [vmem:[%s457_s19] sm:$0xff] %v1104_v44 }
 0x36f PF: > { %s23_s25 = sadd.s32 1, %s1256_s25  }
 0x370   : > { %p20_p4 = scmp.ge.s32.totalorder %s23_s25, 4  }
 0x372   :  { %22 = sbr.rel (!%p20_p4) target bundleno = 1 (0x1), region = 105 }

</bundles_post_ra>
